<compile_context>
chip_gen: v6e
topology: v6e:2x2x1
jax: 0.10.0
libtpu: 0.0.40
codegen_flags: <defaults>
</compile_context>

<pallas_src>
import functools

import jax
import jax.numpy as jnp
from jax.experimental import pallas as pl
from jax.experimental.pallas import tpu as pltpu


def _round_up(x, m):
    return ((x + m - 1) // m) * m


# ----------------------------------------------------------------------------
# Kernel: one fused matmul tile with K-axis accumulation.
#   grid = (outer, inner, K); K is always the last (reduction) axis.
# ----------------------------------------------------------------------------
def _concept_kernel(x_ref, w_ref, b_ref, out_ref, acc_ref):
    k = pl.program_id(2)

    @pl.when(k == 0)
    def _():
        acc_ref[...] = jnp.zeros_like(acc_ref)

    acc_ref[...] += jnp.dot(x_ref[...], w_ref[...],
                            preferred_element_type=jnp.float32)

    @pl.when(k == pl.num_programs(2) - 1)
    def _():
        out_ref[...] = (acc_ref[...] + b_ref[...]).astype(out_ref.dtype)


# ----------------------------------------------------------------------------
# One-time tile / VMEM plan from (F, N, weight dtype, TPU generation).
# Independent of batch size so it can be computed at weight-prep time.
# ----------------------------------------------------------------------------
def _tile_plan(feat, n_cols, w_itemsize):
    kind = ""
    try:
        kind = jax.devices()[0].device_kind.lower()
    except Exception:
        pass
    is_v7x = ("v7" in kind) or ("tpu7" in kind)
    # Unknown device -> use the conservative (v7x-safe) budget.
    small_vmem = is_v7x or (kind == "")

    if small_vmem:
        budget = 40 << 20          # working-set budget (64 MiB physical on v7x)
        vmem_limit = 48 << 20
        tn_cap = 1024
        w_bufs = 2                 # keep default double-buffering
    else:
        budget = 96 << 20          # 128 MiB physical on v5e / v6e
        vmem_limit = 100 << 20
        tn_cap = 2048
        w_bufs = 3                 # room for a 3-deep W pipeline

    tb_nom = 256                   # worst-case batch tile assumed for sizing
    out_itemsize = 4

    def fits(tn, tk):
        x_b = 2 * tb_nom * tk * w_itemsize
        w_b = w_bufs * tk * tn * w_itemsize
        o_b = 2 * tb_nom * tn * out_itemsize
        acc = tb_nom * tn * 4
        bias = 2 * tn * 4
        return x_b + w_b + o_b + acc + bias <= budget

    n128 = _round_up(n_cols, 128)
    tk = feat                       # hold the full feature dim resident if possible
    tn = min(tn_cap, n128)
    while tn > 128 and not fits(tn, tk):
        tn -= 128
    if not fits(tn, tk):
        # Feature dim too wide: tile the contraction axis (multiples of 128).
        tk = 2048
        while tk > 256 and not fits(tn, tk):
            tk //= 2
        tn = min(tn_cap, n128)
        while tn > 128 and not fits(tn, tk):
            tn -= 128

    if is_v7x:
        # Make sure both TensorCores get work along the parallel N axis.
        if _round_up(n_cols, tn) // tn < 2 and n128 >= 256:
            tn = max(128, (n128 // 2) // 128 * 128)

    multi_buffer_w = (w_bufs == 3)
    return tn, tk, vmem_limit, multi_buffer_w


# ----------------------------------------------------------------------------
# One-time weight fusion / padding / cast (hoisted out of the hot path).
# ----------------------------------------------------------------------------
def prepare_concept_weights(w_logit, b_logit, w_emb, b_emb, *,
                            weight_dtype=jnp.bfloat16):
    """w_logit [F,C], b_logit [C], w_emb [C,F,E], b_emb [C,E].

    Returns (w_padded [F_pad, N_pad], b_padded [1, N_pad] f32, meta) where the
    fused column layout is [logits (lane-aligned to 128) | concept embeddings]
    so that out[:, :C] are the logits and out[:, C128:C128+C*E].reshape(B,C,E)
    is the embedding. Padding and dtype cast happen ONCE, here.
    """
    feat, C = w_logit.shape
    E = w_emb.shape[2]
    assert w_emb.shape == (C, feat, E)

    c_cols = _round_up(C, 128)              # lane-align the embedding slab start
    n_cols = c_cols + C * E

    w_emb_flat = jnp.transpose(w_emb, (1, 0, 2)).reshape(feat, C * E)
    w_logit_p = jnp.pad(w_logit, ((0, 0), (0, c_cols - C)))
    b_logit_p = jnp.pad(b_logit, ((0, c_cols - C),))
    w_fused = jnp.concatenate([w_logit_p, w_emb_flat], axis=1)       # [F, n_cols]
    b_fused = jnp.concatenate([b_logit_p, b_emb.reshape(C * E)], 0)  # [n_cols]

    w_itemsize = jnp.dtype(weight_dtype).itemsize
    tn, tk, vmem_limit, multi_buffer_w = _tile_plan(feat, n_cols, w_itemsize)

    feat_pad = _round_up(feat, tk)
    n_pad = _round_up(n_cols, tn)
    w_padded = jnp.pad(w_fused, ((0, feat_pad - feat), (0, n_pad - n_cols))
                       ).astype(weight_dtype)
    b_padded = jnp.pad(b_fused, ((0, n_pad - n_cols),)
                       ).reshape(1, n_pad).astype(jnp.float32)

    meta = dict(nr_concepts=C, embedding_dim=E, tn=tn, tk=tk,
                vmem_limit_bytes=vmem_limit, multi_buffer_w=multi_buffer_w)
    return w_padded, b_padded, meta


# ----------------------------------------------------------------------------
# Hot path.
# ----------------------------------------------------------------------------
@functools.partial(
    jax.jit,
    static_argnames=("nr_concepts", "embedding_dim", "tn", "tk",
                     "vmem_limit_bytes", "multi_buffer_w", "out_dtype"))
def concept_detector_fused(text_features, w_padded, b_padded, *,
                           nr_concepts, embedding_dim, tn, tk,
                           vmem_limit_bytes, multi_buffer_w,
                           out_dtype=jnp.float32):
    B, feat = text_features.shape
    C, E = nr_concepts, embedding_dim
    c_cols = _round_up(C, 128)
    feat_pad, n_pad = w_padded.shape
    assert n_pad >= c_cols + C * E and feat_pad >= feat

    # Batch tile: multiple of 8 for small batches, multiple of 128 once the
    # bf16 path approaches MXU-bound row widths.
    if B <= 64:
        tb = _round_up(B, 8)
    else:
        tb = min(_round_up(B, 128), 256)
    b_pad = _round_up(B, tb)

    # Only the (small) activations are cast / padded per call; the weights were
    # padded & cast once in prepare_concept_weights.
    x = text_features
    if x.dtype != w_padded.dtype:
        x = x.astype(w_padded.dtype)
    x_p = jnp.pad(x, ((0, b_pad - B), (0, feat_pad - feat)))

    n_tiles = n_pad // tn
    b_tiles = b_pad // tb
    k_tiles = feat_pad // tk

    x_bytes = b_pad * feat_pad * x_p.dtype.itemsize
    w_bytes = feat_pad * n_pad * w_padded.dtype.itemsize
    # N-outer keeps W fetched once (small-batch regime); flip to batch-outer
    # when refetching x per N tile would cost more than an extra W pass.
    batch_outer = (k_tiles == 1 and
                   x_bytes * (n_tiles - 1) > w_bytes * (b_tiles - 1))

    if batch_outer:
        grid = (b_tiles, n_tiles, k_tiles)
        x_map = lambda i, j, k: (i, k)
        w_map = lambda i, j, k: (k, j)
        bias_map = lambda i, j, k: (0, j)
        out_map = lambda i, j, k: (i, j)
        x_passes, w_passes = 1, b_tiles
    else:
        grid = (n_tiles, b_tiles, k_tiles)
        x_map = lambda j, i, k: (i, k)
        w_map = lambda j, i, k: (k, j)
        bias_map = lambda j, i, k: (0, j)
        out_map = lambda j, i, k: (i, j)
        x_passes = n_tiles
        w_passes = 1 if k_tiles == 1 else b_tiles

    # Deeper W pipeline on the 128-MiB parts when W is the only heavy stream.
    if (multi_buffer_w and not batch_outer and b_tiles == 1
            and n_tiles * k_tiles >= 3):
        w_spec = pl.BlockSpec((tk, tn), w_map, pipeline_mode=pl.Buffered(3))
    else:
        w_spec = pl.BlockSpec((tk, tn), w_map)

    cost = pl.CostEstimate(
        flops=2 * b_pad * feat_pad * n_pad,
        transcendentals=0,
        bytes_accessed=int(x_bytes * x_passes + w_bytes * w_passes
                           + n_pad * 4
                           + b_pad * n_pad * jnp.dtype(out_dtype).itemsize),
    )

    out = pl.pallas_call(
        _concept_kernel,
        out_shape=jax.ShapeDtypeStruct((b_pad, n_pad), out_dtype),
        grid=grid,
        in_specs=[
            pl.BlockSpec((tb, tk), x_map),
            w_spec,
            pl.BlockSpec((1, tn), bias_map),
        ],
        out_specs=pl.BlockSpec((tb, tn), out_map),
        scratch_shapes=[pltpu.VMEM((tb, tn), jnp.float32)],
        compiler_params=pltpu.CompilerParams(
            dimension_semantics=("parallel", "parallel", "arbitrary"),
            vmem_limit_bytes=vmem_limit_bytes),
        cost_estimate=cost,
    )(x_p, w_padded, b_padded)

    # Slice directly from the padded output (no intermediate [:B,:N] copy);
    # the embedding slab starts at a lane-aligned column (c_cols % 128 == 0).
    concept_logits = out[:B, :C]
    concept_embedding = out[:B, c_cols:c_cols + C * E].reshape(B, C, E)
    return concept_logits, concept_embedding


def concept_detector(text_features, w_logit, b_logit, w_emb, b_emb, *,
                     weight_dtype=jnp.bfloat16, out_dtype=jnp.float32):
    """Convenience wrapper with the original (unfused) parameter layout.
    NOTE: prepare_concept_weights is re-run here; hoist it for the hot path."""
    w_p, b_p, meta = prepare_concept_weights(
        w_logit, b_logit, w_emb, b_emb, weight_dtype=weight_dtype)
    return concept_detector_fused(text_features, w_p, b_p,
                                  out_dtype=out_dtype, **meta)


def _reference(text_features, w_logit, b_logit, w_emb, b_emb):
    logits = text_features @ w_logit + b_logit
    emb = jnp.einsum('bf,cfe->bce', text_features, w_emb) + b_emb[None]
    return logits, emb


if __name__ == "__main__":
    # Small shapes consistent with the forward pass.
    B, F_DIM, C, E = 2, 32, 8, 32   # batch, feature_dim, nr_concepts, embedding_dim

    key = jax.random.PRNGKey(0)
    k_x, k_wl, k_bl, k_we, k_be = jax.random.split(key, 5)

    text_features = jax.random.normal(k_x, (B, F_DIM), dtype=jnp.float32)
    w_logit = jax.random.normal(k_wl, (F_DIM, C), dtype=jnp.float32) * 0.1
    b_logit = jax.random.normal(k_bl, (C,), dtype=jnp.float32) * 0.1
    w_emb = jax.random.normal(k_we, (C, F_DIM, E), dtype=jnp.float32) * 0.1
    b_emb = jax.random.normal(k_be, (C, E), dtype=jnp.float32) * 0.1

    ref_logits, ref_emb = _reference(text_features, w_logit, b_logit, w_emb, b_emb)

    # 1) f32 weight path — tight tolerance.
    w_p32, b_p32, meta32 = prepare_concept_weights(
        w_logit, b_logit, w_emb, b_emb, weight_dtype=jnp.float32)
    logits32, emb32 = concept_detector_fused(text_features, w_p32, b_p32, **meta32)
    jax.block_until_ready((logits32, emb32))
    assert logits32.shape == (B, C) and emb32.shape == (B, C, E)
    assert jnp.allclose(logits32, ref_logits, atol=1e-4, rtol=1e-4)
    assert jnp.allclose(emb32, ref_emb, atol=1e-4, rtol=1e-4)

    # 2) default bf16-weight hot path (halves the dominant HBM weight stream);
    #    accumulation stays f32, so only input-rounding error remains.
    w_p, b_p, meta = prepare_concept_weights(w_logit, b_logit, w_emb, b_emb)
    logits, emb = concept_detector_fused(text_features, w_p, b_p, **meta)
    jax.block_until_ready((logits, emb))
    assert logits.shape == (B, C) and emb.shape == (B, C, E)
    assert jnp.allclose(logits, ref_logits, atol=5e-2, rtol=5e-2)
    assert jnp.allclose(emb, ref_emb, atol=5e-2, rtol=5e-2)

    print("KERNEL_OK")
</pallas_src>

<mosaic_0001>
module attributes {stable_mosaic.version = 11 : i64} {
  func.func @_concept_kernel(%arg0: i32, %arg1: i32, %arg2: i32, %arg3: memref<8x32xf32, #tpu.memory_space<vmem>>, %arg4: memref<32x384xf32, #tpu.memory_space<vmem>>, %arg5: memref<1x384xf32, #tpu.memory_space<vmem>>, %arg6: memref<8x384xf32, #tpu.memory_space<vmem>>, %arg7: memref<8x384xf32, #tpu.memory_space<vmem>>) attributes {dimension_semantics = [#tpu.dimension_semantics<parallel>, #tpu.dimension_semantics<parallel>, #tpu.dimension_semantics<arbitrary>], iteration_bounds = array<i64: 1, 1, 1>, scalar_prefetch = 0 : i64, scratch_operands = 1 : i64, tpu.core_type = #tpu.core_type<tc>, window_params = [{transform_indices = @transform_0, window_bounds = array<i64: 8, 32>}, {transform_indices = @transform_1, window_bounds = array<i64: 32, 384>}, {transform_indices = @transform_2, window_bounds = array<i64: 1, 384>}, {transform_indices = @transform_3, window_bounds = array<i64: 8, 384>}]} {
    %c0_i32 = arith.constant 0 : i32
    %0 = arith.cmpi eq, %arg2, %c0_i32 : i32
    %1 = arith.extui %0 : i1 to i32
    %c0_i32_0 = arith.constant 0 : i32
    %2 = arith.cmpi ne, %1, %c0_i32_0 : i32
    scf.if %2 {
      %cst_10 = arith.constant 0.000000e+00 : f32
      %12 = vector.broadcast %cst_10 : f32 to vector<8x384xf32>
      %c0_11 = arith.constant 0 : index
      %c0_12 = arith.constant 0 : index
      %13 = vector.load %arg7[%c0_11, %c0_12] : memref<8x384xf32, #tpu.memory_space<vmem>>, vector<8x384xf32>
      tpu.vector_store %arg7[%c0_11, %c0_12], %12 {strides = array<i32>} : memref<8x384xf32, #tpu.memory_space<vmem>>, vector<8x384xf32>,
    } else {
    }
    %c0 = arith.constant 0 : index
    %c0_1 = arith.constant 0 : index
    %3 = vector.load %arg7[%c0, %c0_1] : memref<8x384xf32, #tpu.memory_space<vmem>>, vector<8x384xf32>
    %c0_2 = arith.constant 0 : index
    %c0_3 = arith.constant 0 : index
    %4 = vector.load %arg3[%c0_2, %c0_3] : memref<8x32xf32, #tpu.memory_space<vmem>>, vector<8x32xf32>
    %c0_4 = arith.constant 0 : index
    %c0_5 = arith.constant 0 : index
    %5 = vector.load %arg4[%c0_4, %c0_5] : memref<32x384xf32, #tpu.memory_space<vmem>>, vector<32x384xf32>
    %cst = arith.constant dense<0.000000e+00> : vector<8x384xf32>
    %6 = tpu.matmul %4, %5, %cst {dimension_numbers = #tpu.dot_dimension_numbers<[1], [0], [0], [1], [0, 0, 1, 1], [], []>} : vector<8x32xf32>, vector<32x384xf32>, vector<8x384xf32> -> vector<8x384xf32>
    %7 = arith.addf %3, %6 : vector<8x384xf32>
    %c0_6 = arith.constant 0 : index
    %c0_7 = arith.constant 0 : index
    %8 = vector.load %arg7[%c0_6, %c0_7] : memref<8x384xf32, #tpu.memory_space<vmem>>, vector<8x384xf32>
    tpu.vector_store %arg7[%c0_6, %c0_7], %7 {strides = array<i32>} : memref<8x384xf32, #tpu.memory_space<vmem>>, vector<8x384xf32>,
    %c0_i32_8 = arith.constant 0 : i32
    %9 = arith.cmpi eq, %arg2, %c0_i32_8 : i32
    %10 = arith.extui %9 : i1 to i32
    %c0_i32_9 = arith.constant 0 : i32
    %11 = arith.cmpi ne, %10, %c0_i32_9 : i32
    scf.if %11 {
      %c0_10 = arith.constant 0 : index
      %c0_11 = arith.constant 0 : index
      %12 = vector.load %arg7[%c0_10, %c0_11] : memref<8x384xf32, #tpu.memory_space<vmem>>, vector<8x384xf32>
      %c0_12 = arith.constant 0 : index
      %c0_13 = arith.constant 0 : index
      %13 = vector.load %arg5[%c0_12, %c0_13] : memref<1x384xf32, #tpu.memory_space<vmem>>, vector<1x384xf32>
      %14 = vector.broadcast %13 : vector<1x384xf32> to vector<8x384xf32>
      %15 = arith.addf %12, %14 : vector<8x384xf32>
      %c0_14 = arith.constant 0 : index
      %c0_15 = arith.constant 0 : index
      %16 = vector.load %arg6[%c0_14, %c0_15] : memref<8x384xf32, #tpu.memory_space<vmem>>, vector<8x384xf32>
      tpu.vector_store %arg6[%c0_14, %c0_15], %15 {strides = array<i32>} : memref<8x384xf32, #tpu.memory_space<vmem>>, vector<8x384xf32>,
    } else {
    }
    return
  }
  func.func @transform_0(%arg0: i32, %arg1: i32, %arg2: i32) -> (i32, i32) {
    %c0_i32 = arith.constant 0 : i32
    return %arg1, %arg2 : i32, i32
  }
  func.func @transform_1(%arg0: i32, %arg1: i32, %arg2: i32) -> (i32, i32) {
    %c0_i32 = arith.constant 0 : i32
    return %arg2, %arg0 : i32, i32
  }
  func.func @transform_2(%arg0: i32, %arg1: i32, %arg2: i32) -> (i32, i32) {
    %c0_i32 = arith.constant 0 : i32
    %c0_i32_0 = arith.constant 0 : i32
    return %c0_i32, %arg0 : i32, i32
  }
  func.func @transform_3(%arg0: i32, %arg1: i32, %arg2: i32) -> (i32, i32) {
    %c0_i32 = arith.constant 0 : i32
    return %arg1, %arg0 : i32, i32
  }
}

</mosaic_0001>

<bundles_post_ra>
// kernel: concept_detector_fused.1
= control target key start
LH: loop header
LB: loop body
LE: loop exit
PB: predicated region body
PF: predicated region fallthrough
CT: control target
= control target key end

     0   :  { %8 = vsyncpa [#allocation4], 0  ;;  %s281_s12 = smov [#allocation3]   ;;  %s324_s0 = inlined_call_operand.vmem [shape: f32[8,32], index: 0, kind: input, shape index: {}]   ;;  %s325_s1 = inlined_call_operand.hbm [shape: f32[32,384], index: 1, kind: input, shape index: {}]   ;;  %s326_s2 = inlined_call_operand.vmem [shape: f32[1,384], index: 2, kind: input, shape index: {}]   ;;  %s327_s3 = inlined_call_operand.vmem [shape: f32[8,384], index: 3, kind: output, shape index: {}]  }
   0x1   :  { %s16_s13 = sshll.u32 %s281_s12, 4  ;;  %s17_s13 = int_to_ptr.vmem [resolvable:$true] %s16_s13 }
   0x2   :  { %s267_s14 = scalar_lea.vmem %s17_s13, 1536  ;;  %p272_p1 = scmp.lt.s32.totalorder %s17_s13, %s17_s13 }
   0x3   :  { %p268_p0 = scmp.ne.s32.totalorder %s17_s13, %s267_s14  ;;  %p273_p2 = scmp.lt.s32.totalorder %s267_s14, %s267_s14 }
   0x5   :  { %p274_p3 = por %p273_p2, %p272_p1 }
   0x7   :  { %p275_p4 = pnand %p274_p3, %p268_p0 }
   0x9   :  { %278 = shalt.err (!%p275_p4)
}
   0xa   :  { %s282_s15 = smov 384   ;;  %s283_s16 = smov 24  }
   0xb   :  { %22 = dma.hbm_to_vmem [thread:$0]  %s325_s1, 1536, %s17_s13, [#allocation4], %s282_s15, %s282_s15, %s283_s16  }
   0xc   :  { %279 = dma.done.wait [#allocation4], 1536  }
   0xd   :  { %280 = vsyncadd [#allocation4], 4294965760  ;;  %v284_v0 = vmov 0.0   ;;  %vm285_vm0 = vmmov 0   ;;  %v49_v1 = vld [vmem:[#allocation3 + $0x50] sm:$0xff]  ;;  %v48_v2 = vld [vmem:[#allocation3 + $0x48] sm:$0xff]  ;;  %v210_v14 = vlaneseq }
   0xe   :  { %243 = vmatprep.subr.mxu1 %v284_v0  ;;  %119 = vmatprep.mubr.f32.mxu0 %v284_v0  ;;  %v50_v3 = vld [vmem:[#allocation3 + $0x58] sm:$0xff]  ;;  %v45_v5 = vld [vmem:[#allocation3 + $0x30] sm:$0xff]  ;;  %v47_v6 = vld [vmem:[#allocation3 + $0x40] sm:$0xff]  ;;  %vm51_vm1 = vcmask 261120  }
   0xf   :  { %251 = vmatprep.mubr.msk.f32.mxu1 %vm285_vm0, %v284_v0  ;;  %79 = vmatprep.subr.mxu0 %v49_v1  ;;  %v46_v4 = vld [vmem:[#allocation3 + $0x38] sm:$0xff]  ;;  %v43_v7 = vld [vmem:[#allocation3 + $0x20] sm:$0xff]  ;;  %v44_v8 = vld [vmem:[#allocation3 + $0x28] sm:$0xff]  ;;  %v211_v15 = vshrl.u32 %v210_v14, 7 }
  0x10   :  { %244 = vmatpush3.msra.mxu1 %v50_v3  ;;  %80 = vmatpush1.msra.mxu0 %v48_v2  ;;  %v42_v9 = vld [vmem:[#allocation3 + $0x18] sm:$0xff]  ;;  %v40_v10 = vld [vmem:[#allocation3 + $0x8] sm:$0xff]  ;;  %v41_v11 = vld [vmem:[#allocation3 + $0x10] sm:$0xff] }
  0x11   :  { %245 = vmatprep.subr.mxu1 %v284_v0  ;;  %81 = vmatprep.subr.mxu0 %v46_v4  ;;  %v39_v12 = vld [vmem:[#allocation3] sm:$0xff]  ;;  %v220_v16 = vsub.s32 2, %v211_v15  ;;  %v212_v17 = vsub.s32 0, %v211_v15  ;;  %v216_v19 = vsub.s32 1, %v211_v15 }
  0x12   :  { %246 = vmatpush3.msra.mxu1 %v47_v6  ;;  %82 = vmatpush1.msra.mxu0 %v45_v5  ;;  %v38_v13 = vld [vmem:[%s324_s0] sm:$0xff] }
  0x13   :  { %247 = vmatprep.subr.mxu1 %v284_v0  ;;  %83 = vmatprep.subr.mxu0 %v43_v7  ;;  %v208_v18 = vld [vmem:[%s326_s2] sm:$0x7] }
  0x14   :  { %248 = vmatpush3.msra.mxu1 %v44_v8  ;;  %84 = vmatpush1.msra.mxu0 %v42_v9  ;;  %v221_v20 = vrot.slane %v208_v18, %v220_v16  ;;  %v213_v21 = vrot.slane %v208_v18, %v212_v17  ;;  %v217_v23 = vrot.slane %v208_v18, %v216_v19 }
  0x15   :  { %249 = vmatprep.subr.mxu1 %v284_v0  ;;  %85 = vmatprep.subr.mxu0 %v40_v10 }
  0x16   :  { %250 = vmatpush3.msra.mxu1 %v41_v11  ;;  %86 = vmatpush1.msra.mxu0 %v39_v12 }
  0x17   :  { %252 = vmatmul.mubr.msk.f32.vlgmr.msra.gmra.mxu1 %vm51_vm1, %v38_v13  ;;  %236 = vmatmul.mubr.msk.f32.vlgmr.msra.gmra.mxu0 %vm51_vm1, %v38_v13 }
  0xd7   :  { %v192_v22 = vpop.f32.mrf.mxu1  ;;  %v121_v24 = vpop.f32.mrf.mxu0 }
  0xd8   :  { %v227_v25 = vadd.f32 %v221_v20, %v192_v22  ;;  %v225_v26 = vadd.f32 %v213_v21, %v121_v24 }
  0xd9   :  { %v253_v27 = vpop.f32.mrf.mxu1  ;;  %v123_v28 = vpop.f32.mrf.mxu0 }
  0xda   :  { %230 = vst [vmem:[%s327_s3 + $0x10] sm:$0xff] %v227_v25  ;;  %228 = vst [vmem:[%s327_s3] sm:$0xff] %v225_v26  ;;  %v226_v29 = vadd.f32 %v217_v23, %v123_v28 }
  0xdc   :  { %229 = vst [vmem:[%s327_s3 + $0x8] sm:$0xff] %v226_v29 }
  0xdd   :  { %235 = vsyncpa [#allocation4], 1 }

</bundles_post_ra>
